<compile_context>
chip_gen: v5e
topology: v5e:2x2
jax: 0.10.0
libtpu: 0.0.40
codegen_flags: <defaults>
</compile_context>

<pallas_src>
import jax
import jax.numpy as jnp
from jax.experimental import pallas as pl
from jax.experimental.pallas import tpu as pltpu

EPS = 1e-10


def l2norm_kernel(x_ref, o_ref):
    # Accumulate the squared sum in f32 regardless of input dtype.
    x = x_ref[...].astype(jnp.float32)
    ss = jnp.sum(x * x, axis=-1, keepdims=True)   # (tm, 1) lane reduce -> XLU
    inv = jax.lax.rsqrt(ss + EPS)                 # EUP
    o_ref[...] = (x * inv).astype(o_ref.dtype)    # VPU scale


def _round_up(n, m):
    return ((n + m - 1) // m) * m


def _sublane_min(dtype):
    # Minimum row-tile multiple so packed sublane tiles are fully used.
    bits = jnp.dtype(dtype).itemsize * 8
    return {32: 8, 16: 16, 8: 32}.get(bits, 8)


def _choose_tiling(B, D, dtype, tile_bytes=4 << 20):
    """Pick (tm, grid_n): ~tile_bytes moved per step, >=2 (prefer even) steps."""
    smin = _sublane_min(dtype)
    row_bytes = D * jnp.dtype(dtype).itemsize
    # Rows per step so each input block moves ~tile_bytes (dtype-scaled).
    tm_target = max(smin, (tile_bytes // max(row_bytes, 1)) // smin * smin)

    grid_n = max(1, pl.cdiv(B, tm_target))
    # Give both v7x TensorCores work whenever the batch allows it.
    if grid_n == 1 and B > smin:
        grid_n = 2
    # Prefer an even step count for 2-TC balance if tiles stay >= ~1 MiB.
    if grid_n > 1 and grid_n % 2 == 1:
        tm_even = _round_up(pl.cdiv(B, grid_n + 1), smin)
        if tm_even * row_bytes >= (1 << 20):
            grid_n += 1

    tm = _round_up(pl.cdiv(B, grid_n), smin)
    tm = min(tm, _round_up(B, smin))
    grid_n = pl.cdiv(B, tm)
    return tm, grid_n


def l2norm(x):
    """Row-wise L2 normalization. x: (B, D) float array."""
    B, D = x.shape
    itemsize = jnp.dtype(x.dtype).itemsize
    tm, grid_n = _choose_tiling(B, D, x.dtype)

    # Double-buffered in + out footprint, with 2x headroom (capped at 32 MiB,
    # safely below every generation's physical VMEM).
    footprint = 2 * 2 * tm * D * itemsize
    vmem_limit = min(32 << 20, max(16 << 20, 2 * footprint))

    cost = pl.CostEstimate(
        flops=3 * B * D,             # square, reduce, scale
        transcendentals=B,           # one rsqrt per row
        bytes_accessed=2 * B * D * itemsize,
    )

    return pl.pallas_call(
        l2norm_kernel,
        out_shape=jax.ShapeDtypeStruct((B, D), x.dtype),
        grid_spec=pltpu.PrefetchScalarGridSpec(
            num_scalar_prefetch=0,
            grid=(grid_n,),
            in_specs=[pl.BlockSpec((tm, D), lambda i: (i, 0))],
            out_specs=pl.BlockSpec((tm, D), lambda i: (i, 0)),
        ),
        compiler_params=pltpu.CompilerParams(
            dimension_semantics=("parallel",),
            vmem_limit_bytes=vmem_limit,
        ),
        cost_estimate=cost,
    )(x)


def l2norm_ref(x):
    norm = jnp.sqrt(jnp.sum(x.astype(jnp.float32) ** 2, axis=1) + EPS)
    return (x.astype(jnp.float32) / norm[:, None]).astype(x.dtype)


if __name__ == "__main__":
    key = jax.random.PRNGKey(0)
    k0, k1, k2 = jax.random.split(key, 3)

    # HardNet descriptors: batches of 128-dim feature vectors.
    # Case 1: tiny batch (single block path).
    B0, D = 8, 128
    x0 = jax.random.normal(k0, (B0, D), dtype=jnp.float32)
    out0 = l2norm(x0)
    jax.block_until_ready(out0)
    assert out0.shape == (B0, D)
    assert jnp.allclose(out0, l2norm_ref(x0), atol=1e-6, rtol=1e-6), "mismatch (small batch)"

    # Case 2: ragged batch — exercises the cdiv grid with a masked last block
    # (no wrapper-side padding or slicing).
    B1 = 300
    x1 = jax.random.normal(k1, (B1, D), dtype=jnp.float32)
    out1 = l2norm(x1)
    jax.block_until_ready(out1)
    assert out1.shape == (B1, D)
    assert jnp.allclose(out1, l2norm_ref(x1), atol=1e-6, rtol=1e-6), "mismatch (ragged batch)"

    # Case 3: bf16 input — dtype-scaled tile + f32 accumulation path.
    B2 = 37
    x2 = jax.random.normal(k2, (B2, D), dtype=jnp.float32).astype(jnp.bfloat16)
    out2 = l2norm(x2)
    jax.block_until_ready(out2)
    assert out2.shape == (B2, D)
    assert jnp.allclose(out2.astype(jnp.float32),
                        l2norm_ref(x2).astype(jnp.float32),
                        atol=1e-2, rtol=1e-2), "mismatch (bf16)"

    print("KERNEL_OK")
</pallas_src>

<mosaic_0001>
module attributes {stable_mosaic.version = 11 : i64} {
  func.func @l2norm_kernel(%arg0: i32, %arg1: memref<8x128xf32, #tpu.memory_space<vmem>>, %arg2: memref<8x128xf32, #tpu.memory_space<vmem>>) attributes {dimension_semantics = [#tpu.dimension_semantics<parallel>], iteration_bounds = array<i64: 1>, scalar_prefetch = 0 : i64, scratch_operands = 0 : i64, tpu.core_type = #tpu.core_type<tc>, window_params = [{transform_indices = @transform_0, window_bounds = array<i64: 8, 128>}, {transform_indices = @transform_1, window_bounds = array<i64: 8, 128>}]} {
    %c0 = arith.constant 0 : index
    %c0_0 = arith.constant 0 : index
    %0 = vector.load %arg1[%c0, %c0_0] : memref<8x128xf32, #tpu.memory_space<vmem>>, vector<8x128xf32>
    %1 = arith.mulf %0, %0 : vector<8x128xf32>
    %cst = arith.constant dense<0.000000e+00> : vector<8xf32>
    %2 = vector.multi_reduction <add>, %1, %cst [1] : vector<8x128xf32> to vector<8xf32>
    %3 = vector.shape_cast %2 : vector<8xf32> to vector<8x1xf32>
    %cst_1 = arith.constant 1.000000e-10 : f32
    %4 = vector.broadcast %cst_1 : f32 to vector<8x1xf32>
    %5 = arith.addf %3, %4 : vector<8x1xf32>
    %6 = math.rsqrt %5 : vector<8x1xf32>
    %7 = vector.broadcast %6 : vector<8x1xf32> to vector<8x128xf32>
    %8 = arith.mulf %0, %7 : vector<8x128xf32>
    %c0_2 = arith.constant 0 : index
    %c0_3 = arith.constant 0 : index
    %9 = vector.load %arg2[%c0_2, %c0_3] : memref<8x128xf32, #tpu.memory_space<vmem>>, vector<8x128xf32>
    tpu.vector_store %arg2[%c0_2, %c0_3], %8 {strides = array<i32>} : memref<8x128xf32, #tpu.memory_space<vmem>>, vector<8x128xf32>,
    return
  }
  func.func @transform_0(%arg0: i32) -> (i32, i32) {
    %c0_i32 = arith.constant 0 : i32
    %c0_i32_0 = arith.constant 0 : i32
    return %arg0, %c0_i32 : i32, i32
  }
  func.func @transform_1(%arg0: i32) -> (i32, i32) {
    %c0_i32 = arith.constant 0 : i32
    %c0_i32_0 = arith.constant 0 : i32
    return %arg0, %c0_i32 : i32, i32
  }
}

</mosaic_0001>

<bundles_post_ra>
// kernel: tpu_custom_call.1
= control target key start
LH: loop header
LB: loop body
LE: loop exit
PB: predicated region body
PF: predicated region fallthrough
CT: control target
= control target key end

     0   :  { %6 = vsyncpa [#allocation3], 0  ;;  %s131_s0 = inlined_call_operand.hbm [shape: f32[8,128], index: 0, kind: input, shape index: {}]   ;;  %s132_s1 = inlined_call_operand.hbm [shape: f32[8,128], index: 1, kind: output, shape index: {}]  }
   0x1   :  { %7 = vsyncpa [#allocation4], 0  ;;  %s13_s8 = sshll.u32 %s131_s0, 4  ;;  %s113_s9 = smov [#allocation2]   ;;  %s14_s8 = int_to_ptr.hbm [resolvable:$true] %s13_s8 }
   0x2   :  { %s15_s10 = sshll.u32 %s113_s9, 4  ;;  %s16_s10 = int_to_ptr.vmem [resolvable:$true] %s15_s10 }
   0x3   :  { %18 = dma.hbm_to_vmem [thread:$0]  %s14_s8, 128, %s16_s10, [#allocation3]  }
   0x4   :  { %109 = dma.done.wait [#allocation3], 128  }
   0x5   :  { %110 = vsyncadd [#allocation3], 4294967168  ;;  %v23_v0 = vld [vmem:[#allocation2] sm:$0xff]  ;;  %s114_s0 = smov [#allocation5]   ;;  %s47_s14 = sshll.u32 %s132_s1, 4  ;;  %s48_s14 = int_to_ptr.hbm [resolvable:$true] %s47_s14 }
   0x6   :  { %v24_v1 = vmul.f32 %v23_v0, %v23_v0  ;;  %s45_s11 = sshll.u32 %s114_s0, 4  ;;  %s46_s11 = int_to_ptr.vmem [resolvable:$true] %s45_s11 }
   0x8   :  { %25 = vadd.xlane.f32.xlu0 %v24_v1 }
  0x7b   :  { %v26_v2 = vpop.xlane.xlu0 %25 }
  0x7c   :  { %v27_v3 = vadd.f32 1e-10, %v26_v2 }
  0x7e   :  { %59 = vrsqrt.f32 %v27_v3  ;;  %vm34_vm1 = vweird.f32 %v27_v3 }
  0x84   :  { %v60_v4 = vpop.eup %59 }
  0x85   :  { %v29_v5 = vmul.f32 %v60_v4, %v27_v3  ;;  %vm35_vm0 = vweird.f32 %v60_v4 }
  0x86   :  { %vm36_vm2 = vmor %vm34_vm1, %vm35_vm0 }
  0x87   :  { %v30_v6 = vmul.f32 %v60_v4, %v29_v5 }
  0x89   :  { %v31_v7 = vmul.f32 0.5, %v30_v6 }
  0x8b   :  { %v32_v8 = vsub.f32 1.5, %v31_v7 }
  0x8d   :  { %v33_v9 = vmul.f32 %v60_v4, %v32_v8 }
  0x8f   :  { %v37_v10 = vsel %vm36_vm2, %v60_v4, %v33_v9 }
  0x90   :  { %v38_v11 = vmul.f32 %v37_v10, %v23_v0 }
  0x92   :  { %39 = vst [vmem:[#allocation5] sm:$0xff] %v38_v11 }
  0x93   :  { %50 = dma.vmem_to_hbm [thread:$0]  %s46_s11, 128, %s48_s14, [#allocation4]  }
  0x94   :  { %111 = dma.done.wait [#allocation4], 128  }
  0x95   :  { %112 = vsyncadd [#allocation4], 4294967168 }
  0x96   :  { %55 = vsyncpa [#allocation3], 1 }
  0x97   :  { %56 = vsyncpa [#allocation4], 1 }

</bundles_post_ra>
